<compile_context>
chip_gen: v5e
topology: v5e:2x2
jax: 0.10.0
libtpu: 0.0.40
codegen_flags: <defaults>
</compile_context>

<pallas_src>
import jax
import jax.numpy as jnp
from jax.experimental import pallas as pl
from jax.experimental.pallas import tpu as pltpu


# ----------------------------------------------------------------------------
# Pallas kernel: fused shared-weight MLP embedding, all 3 branches per pass.
#   per K step : acc[i] += x_i_block @ W1_block      (bf16 MXU, f32 acc)
#   last K step: out[i]  = relu(acc[i] + b1) @ W2 + b2  (lane-dense store)
# ----------------------------------------------------------------------------
def _embedding_kernel(x1_ref, x2_ref, x3_ref, w1_ref, b1_ref, w2_ref, b2_ref,
                      o_ref, acc_ref):
    k = pl.program_id(0)

    @pl.when(k == 0)
    def _init():
        acc_ref[...] = jnp.zeros_like(acc_ref)

    # Shared W1 K-slice is loaded once per grid step and reused by all three
    # branches; partial products accumulate in f32.
    w1 = w1_ref[...]
    for i, x_ref in enumerate((x1_ref, x2_ref, x3_ref)):
        acc_ref[i] += jnp.dot(
            x_ref[...].astype(jnp.bfloat16), w1,
            preferred_element_type=jnp.float32,
        )

    @pl.when(k == pl.num_programs(0) - 1)
    def _finalize():
        b1 = b1_ref[...]
        w2 = w2_ref[...]
        b2 = b2_ref[...]
        for i in range(3):
            # f32 epilogue (bias + ReLU) -- safe on v5e (no bf16 VPU path).
            h = jnp.maximum(acc_ref[i] + b1, 0.0)
            out = jnp.dot(
                h.astype(jnp.bfloat16), w2, preferred_element_type=jnp.float32
            ) + b2
            o_ref[i] = out.astype(o_ref.dtype)   # lane-dense (B, E_pad) store


def _pick_tk(d):
    """K tile: ~512 (review's suggested range) when it divides D, else D."""
    for cand in (512, 256, 128):
        if d > cand and d % cand == 0:
            return cand
    return d


def triplet_net_forward(x1, x2, x3, params):
    """TripletNet.forward: shared embedding_net applied to x1, x2, x3.

    x1, x2, x3 : (B, C, H, W) float32 (NCHW, matching PyTorch)
    returns (emb1, emb2, emb3), each (B, E) float32
    """
    w1, b1, w2, b2 = params
    B = x1.shape[0]
    D, H = w1.shape
    E = w2.shape[1]

    LANE = 128
    E_pad = (-(-E // LANE)) * LANE          # >= 128, lane-dense output width

    # Zero-pad W2 / b2 to the lane-dense output width (sliced back below).
    w2p = jnp.zeros((H, E_pad), w2.dtype).at[:, :E].set(w2)
    b2p = jnp.zeros((1, E_pad), b2.dtype).at[:, :E].set(b2)

    # bf16 MXU operands; biases stay f32 (epilogue is f32).
    w1_bf = w1.astype(jnp.bfloat16)
    w2_bf = w2p.astype(jnp.bfloat16)

    # Free bitcast: flatten NCHW to (B, D).  Branches stay as three separate
    # inputs -- no stacked (3, B, D) HBM copy.
    x1f = x1.reshape(B, D)
    x2f = x2.reshape(B, D)
    x3f = x3.reshape(B, D)

    tk = _pick_tk(D)
    num_k = D // tk

    cost = pl.CostEstimate(
        flops=6 * B * D * H + 6 * B * H * E_pad,
        transcendentals=0,
        bytes_accessed=(3 * B * D * 4          # activations (f32 in HBM)
                        + D * H * 2            # W1 (bf16)
                        + H * E_pad * 2        # W2 (bf16, padded)
                        + (H + E_pad) * 4      # biases (f32)
                        + 3 * B * E_pad * 4),  # output slab
    )

    out = pl.pallas_call(
        _embedding_kernel,
        out_shape=jax.ShapeDtypeStruct((3, B, E_pad), jnp.float32),
        grid=(num_k,),                                     # K reduction only
        in_specs=[
            pl.BlockSpec((B, tk), lambda k: (0, k)),       # x1 K-slice
            pl.BlockSpec((B, tk), lambda k: (0, k)),       # x2 K-slice
            pl.BlockSpec((B, tk), lambda k: (0, k)),       # x3 K-slice
            pl.BlockSpec((tk, H), lambda k: (k, 0)),       # W1 K-slice (bf16)
            pl.BlockSpec((1, H), lambda k: (0, 0)),        # b1 (VMEM-resident)
            pl.BlockSpec((H, E_pad), lambda k: (0, 0)),    # W2 (VMEM-resident)
            pl.BlockSpec((1, E_pad), lambda k: (0, 0)),    # b2 (VMEM-resident)
        ],
        out_specs=pl.BlockSpec((3, B, E_pad), lambda k: (0, 0, 0)),
        scratch_shapes=[pltpu.VMEM((3, B, H), jnp.float32)],   # f32 accumulator
        compiler_params=pltpu.CompilerParams(
            dimension_semantics=("arbitrary",),            # K is a reduction
        ),
        cost_estimate=cost,
    )(x1f, x2f, x3f, w1_bf, b1, w2_bf, b2p)

    emb = out[:, :, :E]                                    # drop lane padding
    return emb[0], emb[1], emb[2]


def triplet_net_reference(x1, x2, x3, params):
    """Pure-JAX f32 reference of the same forward (for correctness check)."""
    w1, b1, w2, b2 = params

    def embed(x):
        xf = x.reshape(x.shape[0], -1)
        h = jnp.maximum(xf @ w1 + b1, 0.0)
        return h @ w2 + b2

    return embed(x1), embed(x2), embed(x3)


def init_params(key, d_in, hidden, embed_dim):
    """Deterministic parameter init (synthetic weights, no checkpoint)."""
    k1, k2, k3, k4 = jax.random.split(key, 4)
    w1 = jax.random.normal(k1, (d_in, hidden), jnp.float32) * 0.02
    b1 = jax.random.normal(k2, (1, hidden), jnp.float32) * 0.01
    w2 = jax.random.normal(k3, (hidden, embed_dim), jnp.float32) * 0.02
    b2 = jax.random.normal(k4, (1, embed_dim), jnp.float32) * 0.01
    return w1, b1, w2, b2


if __name__ == "__main__":
    # Small deterministic inputs: batch=2, channels=4, spatial=16x16 (NCHW).
    B, C, Hs, Ws = 2, 4, 16, 16
    D = C * Hs * Ws          # 1024 flattened features (-> 2 K steps of 512)
    HIDDEN = 32
    EMBED = 32

    key = jax.random.PRNGKey(0)
    kx1, kx2, kx3, kp = jax.random.split(key, 4)
    x1 = jax.random.normal(kx1, (B, C, Hs, Ws), jnp.float32)
    x2 = jax.random.normal(kx2, (B, C, Hs, Ws), jnp.float32)
    x3 = jax.random.normal(kx3, (B, C, Hs, Ws), jnp.float32)
    params = init_params(kp, D, HIDDEN, EMBED)

    fwd = jax.jit(triplet_net_forward)
    o1, o2, o3 = fwd(x1, x2, x3, params)
    jax.block_until_ready((o1, o2, o3))

    # Sanity-check against the pure-JAX f32 reference.  Tolerance is loosened
    # vs. the f32-only version because the MXU operands are bf16 (f32 acc).
    r1, r2, r3 = triplet_net_reference(x1, x2, x3, params)
    for o, r in ((o1, r1), (o2, r2), (o3, r3)):
        assert o.shape == (B, EMBED)
        assert jnp.allclose(o, r, atol=1e-2, rtol=1e-2)

    print("KERNEL_OK")
</pallas_src>

<mosaic_0001>
module attributes {stable_mosaic.version = 11 : i64} {
  func.func @_embedding_kernel(%arg0: i32, %arg1: memref<2x512xf32, #tpu.memory_space<vmem>>, %arg2: memref<2x512xf32, #tpu.memory_space<vmem>>, %arg3: memref<2x512xf32, #tpu.memory_space<vmem>>, %arg4: memref<512x32xbf16, #tpu.memory_space<vmem>>, %arg5: memref<1x32xf32, #tpu.memory_space<vmem>>, %arg6: memref<32x128xbf16, #tpu.memory_space<vmem>>, %arg7: memref<1x128xf32, #tpu.memory_space<vmem>>, %arg8: memref<3x2x128xf32, #tpu.memory_space<vmem>>, %arg9: memref<3x2x32xf32, #tpu.memory_space<vmem>>) attributes {dimension_semantics = [#tpu.dimension_semantics<arbitrary>], iteration_bounds = array<i64: 2>, scalar_prefetch = 0 : i64, scratch_operands = 1 : i64, tpu.core_type = #tpu.core_type<tc>, window_params = [{transform_indices = @transform_0, window_bounds = array<i64: 2, 512>}, {transform_indices = @transform_1, window_bounds = array<i64: 2, 512>}, {transform_indices = @transform_2, window_bounds = array<i64: 2, 512>}, {transform_indices = @transform_3, window_bounds = array<i64: 512, 32>}, {pipeline_mode = #tpu.pipeline_mode<synchronous>, transform_indices = @transform_4, window_bounds = array<i64: 1, 32>}, {pipeline_mode = #tpu.pipeline_mode<synchronous>, transform_indices = @transform_5, window_bounds = array<i64: 32, 128>}, {pipeline_mode = #tpu.pipeline_mode<synchronous>, transform_indices = @transform_6, window_bounds = array<i64: 1, 128>}, {pipeline_mode = #tpu.pipeline_mode<synchronous>, transform_indices = @transform_7, window_bounds = array<i64: 3, 2, 128>}]} {
    %c0_i32 = arith.constant 0 : i32
    %0 = arith.cmpi eq, %arg0, %c0_i32 : i32
    %1 = arith.extui %0 : i1 to i32
    %c0_i32_0 = arith.constant 0 : i32
    %2 = arith.cmpi ne, %1, %c0_i32_0 : i32
    scf.if %2 {
      %cst_27 = arith.constant 0.000000e+00 : f32
      %34 = vector.broadcast %cst_27 : f32 to vector<3x2x32xf32>
      %c0_28 = arith.constant 0 : index
      %c0_29 = arith.constant 0 : index
      %c0_30 = arith.constant 0 : index
      %35 = vector.load %arg9[%c0_28, %c0_29, %c0_30] : memref<3x2x32xf32, #tpu.memory_space<vmem>>, vector<3x2x32xf32>
      tpu.vector_store %arg9[%c0_28, %c0_29, %c0_30], %34 {strides = array<i32>} : memref<3x2x32xf32, #tpu.memory_space<vmem>>, vector<3x2x32xf32>,
    } else {
    }
    %c0 = arith.constant 0 : index
    %c0_1 = arith.constant 0 : index
    %3 = vector.load %arg4[%c0, %c0_1] : memref<512x32xbf16, #tpu.memory_space<vmem>>, vector<512x32xbf16>
    %c0_2 = arith.constant 0 : index
    %c0_3 = arith.constant 0 : index
    %c0_4 = arith.constant 0 : index
    %4 = vector.load %arg9[%c0_2, %c0_3, %c0_4] : memref<3x2x32xf32, #tpu.memory_space<vmem>>, vector<1x2x32xf32>
    %5 = vector.shape_cast %4 : vector<1x2x32xf32> to vector<2x32xf32>
    %c0_5 = arith.constant 0 : index
    %c0_6 = arith.constant 0 : index
    %6 = vector.load %arg1[%c0_5, %c0_6] : memref<2x512xf32, #tpu.memory_space<vmem>>, vector<2x512xf32>
    %7 = arith.truncf %6 : vector<2x512xf32> to vector<2x512xbf16>
    %cst = arith.constant dense<0.000000e+00> : vector<2x32xf32>
    %8 = tpu.matmul %7, %3, %cst {dimension_numbers = #tpu.dot_dimension_numbers<[1], [0], [0], [1], [0, 0, 1, 1], [], []>} : vector<2x512xbf16>, vector<512x32xbf16>, vector<2x32xf32> -> vector<2x32xf32>
    %9 = arith.addf %5, %8 : vector<2x32xf32>
    %c0_7 = arith.constant 0 : index
    %c0_8 = arith.constant 0 : index
    %c0_9 = arith.constant 0 : index
    %10 = vector.load %arg9[%c0_7, %c0_8, %c0_9] : memref<3x2x32xf32, #tpu.memory_space<vmem>>, vector<1x2x32xf32>
    %11 = vector.shape_cast %10 : vector<1x2x32xf32> to vector<2x32xf32>
    %12 = vector.shape_cast %9 : vector<2x32xf32> to vector<1x2x32xf32>
    tpu.vector_store %arg9[%c0_7, %c0_8, %c0_9], %12 {strides = array<i32>} : memref<3x2x32xf32, #tpu.memory_space<vmem>>, vector<1x2x32xf32>,
    %c1 = arith.constant 1 : index
    %c0_10 = arith.constant 0 : index
    %c0_11 = arith.constant 0 : index
    %13 = vector.load %arg9[%c1, %c0_10, %c0_11] : memref<3x2x32xf32, #tpu.memory_space<vmem>>, vector<1x2x32xf32>
    %14 = vector.shape_cast %13 : vector<1x2x32xf32> to vector<2x32xf32>
    %c0_12 = arith.constant 0 : index
    %c0_13 = arith.constant 0 : index
    %15 = vector.load %arg2[%c0_12, %c0_13] : memref<2x512xf32, #tpu.memory_space<vmem>>, vector<2x512xf32>
    %16 = arith.truncf %15 : vector<2x512xf32> to vector<2x512xbf16>
    %cst_14 = arith.constant dense<0.000000e+00> : vector<2x32xf32>
    %17 = tpu.matmul %16, %3, %cst_14 {dimension_numbers = #tpu.dot_dimension_numbers<[1], [0], [0], [1], [0, 0, 1, 1], [], []>} : vector<2x512xbf16>, vector<512x32xbf16>, vector<2x32xf32> -> vector<2x32xf32>
    %18 = arith.addf %14, %17 : vector<2x32xf32>
    %c1_15 = arith.constant 1 : index
    %c0_16 = arith.constant 0 : index
    %c0_17 = arith.constant 0 : index
    %19 = vector.load %arg9[%c1_15, %c0_16, %c0_17] : memref<3x2x32xf32, #tpu.memory_space<vmem>>, vector<1x2x32xf32>
    %20 = vector.shape_cast %19 : vector<1x2x32xf32> to vector<2x32xf32>
    %21 = vector.shape_cast %18 : vector<2x32xf32> to vector<1x2x32xf32>
    tpu.vector_store %arg9[%c1_15, %c0_16, %c0_17], %21 {strides = array<i32>} : memref<3x2x32xf32, #tpu.memory_space<vmem>>, vector<1x2x32xf32>,
    %c2 = arith.constant 2 : index
    %c0_18 = arith.constant 0 : index
    %c0_19 = arith.constant 0 : index
    %22 = vector.load %arg9[%c2, %c0_18, %c0_19] : memref<3x2x32xf32, #tpu.memory_space<vmem>>, vector<1x2x32xf32>
    %23 = vector.shape_cast %22 : vector<1x2x32xf32> to vector<2x32xf32>
    %c0_20 = arith.constant 0 : index
    %c0_21 = arith.constant 0 : index
    %24 = vector.load %arg3[%c0_20, %c0_21] : memref<2x512xf32, #tpu.memory_space<vmem>>, vector<2x512xf32>
    %25 = arith.truncf %24 : vector<2x512xf32> to vector<2x512xbf16>
    %cst_22 = arith.constant dense<0.000000e+00> : vector<2x32xf32>
    %26 = tpu.matmul %25, %3, %cst_22 {dimension_numbers = #tpu.dot_dimension_numbers<[1], [0], [0], [1], [0, 0, 1, 1], [], []>} : vector<2x512xbf16>, vector<512x32xbf16>, vector<2x32xf32> -> vector<2x32xf32>
    %27 = arith.addf %23, %26 : vector<2x32xf32>
    %c2_23 = arith.constant 2 : index
    %c0_24 = arith.constant 0 : index
    %c0_25 = arith.constant 0 : index
    %28 = vector.load %arg9[%c2_23, %c0_24, %c0_25] : memref<3x2x32xf32, #tpu.memory_space<vmem>>, vector<1x2x32xf32>
    %29 = vector.shape_cast %28 : vector<1x2x32xf32> to vector<2x32xf32>
    %30 = vector.shape_cast %27 : vector<2x32xf32> to vector<1x2x32xf32>
    tpu.vector_store %arg9[%c2_23, %c0_24, %c0_25], %30 {strides = array<i32>} : memref<3x2x32xf32, #tpu.memory_space<vmem>>, vector<1x2x32xf32>,
    %c1_i32 = arith.constant 1 : i32
    %31 = arith.cmpi eq, %arg0, %c1_i32 : i32
    %32 = arith.extui %31 : i1 to i32
    %c0_i32_26 = arith.constant 0 : i32
    %33 = arith.cmpi ne, %32, %c0_i32_26 : i32
    scf.if %33 {
      %c0_27 = arith.constant 0 : index
      %c0_28 = arith.constant 0 : index
      %34 = vector.load %arg5[%c0_27, %c0_28] : memref<1x32xf32, #tpu.memory_space<vmem>>, vector<1x32xf32>
      %c0_29 = arith.constant 0 : index
      %c0_30 = arith.constant 0 : index
      %35 = vector.load %arg6[%c0_29, %c0_30] : memref<32x128xbf16, #tpu.memory_space<vmem>>, vector<32x128xbf16>
      %c0_31 = arith.constant 0 : index
      %c0_32 = arith.constant 0 : index
      %36 = vector.load %arg7[%c0_31, %c0_32] : memref<1x128xf32, #tpu.memory_space<vmem>>, vector<1x128xf32>
      %c0_33 = arith.constant 0 : index
      %c0_34 = arith.constant 0 : index
      %c0_35 = arith.constant 0 : index
      %37 = vector.load %arg9[%c0_33, %c0_34, %c0_35] : memref<3x2x32xf32, #tpu.memory_space<vmem>>, vector<1x2x32xf32>
      %38 = vector.shape_cast %37 : vector<1x2x32xf32> to vector<2x32xf32>
      %39 = vector.broadcast %34 : vector<1x32xf32> to vector<2x32xf32>
      %40 = arith.addf %38, %39 : vector<2x32xf32>
      %cst_36 = arith.constant 0.000000e+00 : f32
      %41 = vector.broadcast %cst_36 : f32 to vector<2x32xf32>
      %42 = arith.maximumf %40, %41 : vector<2x32xf32>
      %43 = arith.truncf %42 : vector<2x32xf32> to vector<2x32xbf16>
      %cst_37 = arith.constant dense<0.000000e+00> : vector<2x128xf32>
      %44 = tpu.matmul %43, %35, %cst_37 {dimension_numbers = #tpu.dot_dimension_numbers<[1], [0], [0], [1], [0, 0, 1, 1], [], []>} : vector<2x32xbf16>, vector<32x128xbf16>, vector<2x128xf32> -> vector<2x128xf32>
      %45 = vector.broadcast %36 : vector<1x128xf32> to vector<2x128xf32>
      %46 = arith.addf %44, %45 : vector<2x128xf32>
      %c0_38 = arith.constant 0 : index
      %c0_39 = arith.constant 0 : index
      %c0_40 = arith.constant 0 : index
      %47 = vector.load %arg8[%c0_38, %c0_39, %c0_40] : memref<3x2x128xf32, #tpu.memory_space<vmem>>, vector<1x2x128xf32>
      %48 = vector.shape_cast %47 : vector<1x2x128xf32> to vector<2x128xf32>
      %49 = vector.shape_cast %46 : vector<2x128xf32> to vector<1x2x128xf32>
      tpu.vector_store %arg8[%c0_38, %c0_39, %c0_40], %49 {strides = array<i32>} : memref<3x2x128xf32, #tpu.memory_space<vmem>>, vector<1x2x128xf32>,
      %c1_41 = arith.constant 1 : index
      %c0_42 = arith.constant 0 : index
      %c0_43 = arith.constant 0 : index
      %50 = vector.load %arg9[%c1_41, %c0_42, %c0_43] : memref<3x2x32xf32, #tpu.memory_space<vmem>>, vector<1x2x32xf32>
      %51 = vector.shape_cast %50 : vector<1x2x32xf32> to vector<2x32xf32>
      %52 = vector.broadcast %34 : vector<1x32xf32> to vector<2x32xf32>
      %53 = arith.addf %51, %52 : vector<2x32xf32>
      %cst_44 = arith.constant 0.000000e+00 : f32
      %54 = vector.broadcast %cst_44 : f32 to vector<2x32xf32>
      %55 = arith.maximumf %53, %54 : vector<2x32xf32>
      %56 = arith.truncf %55 : vector<2x32xf32> to vector<2x32xbf16>
      %cst_45 = arith.constant dense<0.000000e+00> : vector<2x128xf32>
      %57 = tpu.matmul %56, %35, %cst_45 {dimension_numbers = #tpu.dot_dimension_numbers<[1], [0], [0], [1], [0, 0, 1, 1], [], []>} : vector<2x32xbf16>, vector<32x128xbf16>, vector<2x128xf32> -> vector<2x128xf32>
      %58 = vector.broadcast %36 : vector<1x128xf32> to vector<2x128xf32>
      %59 = arith.addf %57, %58 : vector<2x128xf32>
      %c1_46 = arith.constant 1 : index
      %c0_47 = arith.constant 0 : index
      %c0_48 = arith.constant 0 : index
      %60 = vector.load %arg8[%c1_46, %c0_47, %c0_48] : memref<3x2x128xf32, #tpu.memory_space<vmem>>, vector<1x2x128xf32>
      %61 = vector.shape_cast %60 : vector<1x2x128xf32> to vector<2x128xf32>
      %62 = vector.shape_cast %59 : vector<2x128xf32> to vector<1x2x128xf32>
      tpu.vector_store %arg8[%c1_46, %c0_47, %c0_48], %62 {strides = array<i32>} : memref<3x2x128xf32, #tpu.memory_space<vmem>>, vector<1x2x128xf32>,
      %c2_49 = arith.constant 2 : index
      %c0_50 = arith.constant 0 : index
      %c0_51 = arith.constant 0 : index
      %63 = vector.load %arg9[%c2_49, %c0_50, %c0_51] : memref<3x2x32xf32, #tpu.memory_space<vmem>>, vector<1x2x32xf32>
      %64 = vector.shape_cast %63 : vector<1x2x32xf32> to vector<2x32xf32>
      %65 = vector.broadcast %34 : vector<1x32xf32> to vector<2x32xf32>
      %66 = arith.addf %64, %65 : vector<2x32xf32>
      %cst_52 = arith.constant 0.000000e+00 : f32
      %67 = vector.broadcast %cst_52 : f32 to vector<2x32xf32>
      %68 = arith.maximumf %66, %67 : vector<2x32xf32>
      %69 = arith.truncf %68 : vector<2x32xf32> to vector<2x32xbf16>
      %cst_53 = arith.constant dense<0.000000e+00> : vector<2x128xf32>
      %70 = tpu.matmul %69, %35, %cst_53 {dimension_numbers = #tpu.dot_dimension_numbers<[1], [0], [0], [1], [0, 0, 1, 1], [], []>} : vector<2x32xbf16>, vector<32x128xbf16>, vector<2x128xf32> -> vector<2x128xf32>
      %71 = vector.broadcast %36 : vector<1x128xf32> to vector<2x128xf32>
      %72 = arith.addf %70, %71 : vector<2x128xf32>
      %c2_54 = arith.constant 2 : index
      %c0_55 = arith.constant 0 : index
      %c0_56 = arith.constant 0 : index
      %73 = vector.load %arg8[%c2_54, %c0_55, %c0_56] : memref<3x2x128xf32, #tpu.memory_space<vmem>>, vector<1x2x128xf32>
      %74 = vector.shape_cast %73 : vector<1x2x128xf32> to vector<2x128xf32>
      %75 = vector.shape_cast %72 : vector<2x128xf32> to vector<1x2x128xf32>
      tpu.vector_store %arg8[%c2_54, %c0_55, %c0_56], %75 {strides = array<i32>} : memref<3x2x128xf32, #tpu.memory_space<vmem>>, vector<1x2x128xf32>,
    } else {
    }
    return
  }
  func.func @transform_0(%arg0: i32) -> (i32, i32) {
    %c0_i32 = arith.constant 0 : i32
    %c0_i32_0 = arith.constant 0 : i32
    return %c0_i32, %arg0 : i32, i32
  }
  func.func @transform_1(%arg0: i32) -> (i32, i32) {
    %c0_i32 = arith.constant 0 : i32
    %c0_i32_0 = arith.constant 0 : i32
    return %c0_i32, %arg0 : i32, i32
  }
  func.func @transform_2(%arg0: i32) -> (i32, i32) {
    %c0_i32 = arith.constant 0 : i32
    %c0_i32_0 = arith.constant 0 : i32
    return %c0_i32, %arg0 : i32, i32
  }
  func.func @transform_3(%arg0: i32) -> (i32, i32) {
    %c0_i32 = arith.constant 0 : i32
    %c0_i32_0 = arith.constant 0 : i32
    return %arg0, %c0_i32 : i32, i32
  }
  func.func @transform_4(%arg0: i32) -> (i32, i32) {
    %c0_i32 = arith.constant 0 : i32
    %c0_i32_0 = arith.constant 0 : i32
    %c0_i32_1 = arith.constant 0 : i32
    return %c0_i32, %c0_i32_0 : i32, i32
  }
  func.func @transform_5(%arg0: i32) -> (i32, i32) {
    %c0_i32 = arith.constant 0 : i32
    %c0_i32_0 = arith.constant 0 : i32
    %c0_i32_1 = arith.constant 0 : i32
    return %c0_i32, %c0_i32_0 : i32, i32
  }
  func.func @transform_6(%arg0: i32) -> (i32, i32) {
    %c0_i32 = arith.constant 0 : i32
    %c0_i32_0 = arith.constant 0 : i32
    %c0_i32_1 = arith.constant 0 : i32
    return %c0_i32, %c0_i32_0 : i32, i32
  }
  func.func @transform_7(%arg0: i32) -> (i32, i32, i32) {
    %c0_i32 = arith.constant 0 : i32
    %c0_i32_0 = arith.constant 0 : i32
    %c0_i32_1 = arith.constant 0 : i32
    %c0_i32_2 = arith.constant 0 : i32
    return %c0_i32, %c0_i32_0, %c0_i32_1 : i32, i32, i32
  }
}

</mosaic_0001>

<bundles_post_ra>
// kernel: triplet_net_forward.1
= control target key start
LH: loop header
LB: loop body
LE: loop exit
PB: predicated region body
PF: predicated region fallthrough
CT: control target
= control target key end

     0   :  { %s1219_s24 = smov 0   ;;  %s1486_s0 = inlined_call_operand.vmem [shape: f32[2,1024], index: 0, kind: input, shape index: {}]   ;;  %s1487_s1 = inlined_call_operand.vmem [shape: f32[2,1024], index: 1, kind: input, shape index: {}]   ;;  %s1488_s2 = inlined_call_operand.vmem [shape: f32[2,1024], index: 2, kind: input, shape index: {}]   ;;  %s1489_s3 = inlined_call_operand.vmem [shape: bf16[1024,32], index: 3, kind: input, shape index: {}]   ;;  %s1490_s4 = inlined_call_operand.vmem [shape: f32[1,32], index: 4, kind: input, shape index: {}]   ;;  %s1491_s5 = inlined_call_operand.vmem [shape: bf16[32,128], index: 5, kind: input, shape index: {}]   ;;  %s1492_s6 = inlined_call_operand.vmem [shape: f32[1,128], index: 6, kind: input, shape index: {}]   ;;  %s1493_s7 = inlined_call_operand.vmem [shape: f32[3,2,128], index: 7, kind: output, shape index: {}]  }
   0x1 LB: > { %s1225_s25 = sadd.s32 4294967295, %s1176_s24   ;;  %p971_p0 = scmp.ge.s32.totalorder %s1176_s24, 1  ;;  %s1176_s24 = sphi %s1219_s24, %s17_s24  }
   0x2   : > { %p266_p1 = scmp.lt.s32.totalorder %s1176_s24, 3 }
   0x4   : > { %p267_p2 = pnand %p971_p0, %p266_p1 }
   0x5   : > { %s972_s26 = sshll.u32 (!%p267_p2), %s1225_s25, 2  ;;  %s978_s27 = sshll.u32 (!%p267_p2), %s1225_s25, 6 }
   0x6   : > { %270 = sbr.rel (%p267_p2) target bundleno = 414 (0x19e), region = 48  ;;  %p309_p3 = scmp.lt.s32.totalorder (!%p267_p2), %s972_s26, 7 }
   0x7   : > { %p327_p4 = scmp.lt.s32.totalorder (!%p267_p2), %s978_s27, 127  ;;  %p980_p5 = scmp.ne.s32.totalorder (!%p267_p2), %s1225_s25, 0 }
   0xb   : > { %s1495_s26 = smov (!%p309_p3, %s972_s26), 7  ;;  %s1497_s27 = smov (!%p327_p4, %s978_s27), 127 }
   0xc   : > { %s1231_s28 = sshll.u32 %s1495_s26, 1  ;;  %s979_s15 = sshll.u32 %s1497_s27, 2 }
   0xd   : > { %s312_s8 = scalar_lea.vmem %s1486_s0, %s1231_s28  ;;  %s318_s11 = scalar_lea.vmem %s1487_s1, %s1231_s28 }
   0xe   : > { %s324_s14 = scalar_lea.vmem %s1488_s2, %s1231_s28  ;;  %s1248_s18 = scalar_lea.vmem %s1489_s3, %s979_s15 }
   0xf   : > { %336 = sbr.rel (%p980_p5) target bundleno = 24 (0x18), region = 52 }
  0x14   : > { %vm337_vm0 = vcmask 254976   ;;  %v1178_v0 = vmov 0.0  }
  0x15   : > { %338 = vst.msk [vmem:[#allocation2] sm:$0x3] %vm337_vm0, %v1178_v0 }
  0x16   : > { %339 = vst.msk [vmem:[#allocation2 + $0x2] sm:$0x3] %vm337_vm0, %v1178_v0 }
  0x17   : > { %340 = vst.msk [vmem:[#allocation2 + $0x4] sm:$0x3] %vm337_vm0, %v1178_v0 }
  0x18 PF: > { %v1252_v1 = vld [vmem:[%s1248_s18 + $0x38] sm:$0xff]  ;;  %v1266_v5 = vld [vmem:[%s1248_s18 + $0x30] sm:$0xff]  ;;  %v1282_v9 = vld [vmem:[%s1248_s18 + $0x28] sm:$0xff]  ;;  %vm666_vm1 = vcmask 254976   ;;  %p1109_p6 = scmp.ne.s32.totalorder %s1225_s25, 1 }
  0x19   : > { %v1255_v2 = vld [vmem:[%s1248_s18 + $0x78] sm:$0xff]  ;;  %613 = vmatpush.bf16.msra.mxu0 %v1252_v1  ;;  %v1269_v6 = vld [vmem:[%s1248_s18 + $0x70] sm:$0xff]  ;;  %v1285_v10 = vld [vmem:[%s1248_s18 + $0x68] sm:$0xff] }
  0x1a   : > { %v1258_v3 = vld [vmem:[%s1248_s18 + $0xb8] sm:$0xff]  ;;  %626 = vmatpush.bf16.msra.mxu1 %v1255_v2  ;;  %v1274_v7 = vld [vmem:[%s1248_s18 + $0xb0] sm:$0xff]  ;;  %v1290_v11 = vld [vmem:[%s1248_s18 + $0xa8] sm:$0xff] }
  0x1b   : > { %v1261_v4 = vld [vmem:[%s1248_s18 + $0xf8] sm:$0xff]  ;;  %639 = vmatpush.bf16.msra.mxu2 %v1258_v3  ;;  %v1277_v8 = vld [vmem:[%s1248_s18 + $0xf0] sm:$0xff]  ;;  %v1293_v12 = vld [vmem:[%s1248_s18 + $0xe8] sm:$0xff] }
  0x1c   : > { %652 = vmatpush.bf16.msra.mxu3 %v1261_v4  ;;  %v1298_v13 = vld [vmem:[%s1248_s18 + $0x20] sm:$0xff]  ;;  %v1319_v18 = vld [vmem:[%s1248_s18 + $0x18] sm:$0xff]  ;;  %v1335_v22 = vld [vmem:[%s1248_s18 + $0x10] sm:$0xff] }
  0x1d   : > { %614 = vmatpush.bf16.msra.mxu0 %v1266_v5  ;;  %v1301_v14 = vld [vmem:[%s1248_s18 + $0x60] sm:$0xff]  ;;  %v1322_v19 = vld [vmem:[%s1248_s18 + $0x58] sm:$0xff]  ;;  %v1338_v23 = vld [vmem:[%s1248_s18 + $0x50] sm:$0xff] }
  0x1e   : > { %627 = vmatpush.bf16.msra.mxu1 %v1269_v6  ;;  %v406_v15 = vld [vmem:[%s312_s8] sm:$0xff]  ;;  %v1327_v20 = vld [vmem:[%s1248_s18 + $0x98] sm:$0xff]  ;;  %v1343_v24 = vld [vmem:[%s1248_s18 + $0x90] sm:$0xff] }
  0x1f   : > { %640 = vmatpush.bf16.msra.mxu2 %v1274_v7  ;;  %v1311_v16 = vld [vmem:[%s1248_s18 + $0xa0] sm:$0xff]  ;;  %408 = vst [vmem:[#allocation1] ss:$4 sm:$0xff] %v406_v15  ;;  %v1330_v21 = vld [vmem:[%s1248_s18 + $0xd8] sm:$0xff]  ;;  %v1346_v25 = vld [vmem:[%s1248_s18 + $0xd0] sm:$0xff] }
  0x20   : > { %653 = vmatpush.bf16.msra.mxu3 %v1277_v8  ;;  %v1314_v17 = vld [vmem:[%s1248_s18 + $0xe0] sm:$0xff]  ;;  %v1351_v26 = vld [vmem:[%s1248_s18 + $0x8] sm:$0xff] }
  0x21   : > { %615 = vmatpush.bf16.msra.mxu0 %v1282_v9  ;;  %v1354_v27 = vld [vmem:[%s1248_s18 + $0x48] sm:$0xff]  ;;  %v670_v34 = vld [vmem:[%s318_s11] sm:$0xff] }
  0x22   : > { %628 = vmatpush.bf16.msra.mxu1 %v1285_v10  ;;  %v1359_v28 = vld [vmem:[%s1248_s18 + $0x88] sm:$0xff]  ;;  %v1372_v35 = vld [vmem:[%s1248_s18] sm:$0xff] }
  0x23   : > { %641 = vmatpush.bf16.msra.mxu2 %v1290_v11  ;;  %v1362_v29 = vld [vmem:[%s1248_s18 + $0xc8] sm:$0xff]  ;;  %v1375_v36 = vld [vmem:[%s1248_s18 + $0x40] sm:$0xff] }
  0x24   : > { %654 = vmatpush.bf16.msra.mxu3 %v1293_v12  ;;  %v1380_v37 = vld [vmem:[%s1248_s18 + $0x80] sm:$0xff]  ;;  %v669_v15 = vld [vmem:[#allocation2 + $0x2] sm:$0x3] }
  0x25   : > { %616 = vmatpush.bf16.msra.mxu0 %v1298_v13  ;;  %v1383_v38 = vld [vmem:[%s1248_s18 + $0xc0] sm:$0xff] }
  0x26   : > { %629 = vmatpush.bf16.msra.mxu1 %v1301_v14  ;;  %v411_v30 = vld.sshfl [vmem:[#allocation1 + $0x10] sm:$0xff pattern:$0x73625140]  ;;  %v412_v31 = vld.sshfl [vmem:[#allocation1 + $0x18] sm:$0xff pattern:$0x73625140] }
  0x27   : > { %642 = vmatpush.bf16.msra.mxu2 %v1311_v16  ;;  %v409_v32 = vld.sshfl [vmem:[#allocation1] sm:$0xff pattern:$0x73625140]  ;;  %v410_v33 = vld.sshfl [vmem:[#allocation1 + $0x8] sm:$0xff pattern:$0x73625140]  ;;  %v419_v39 = vpack.c.bf16 %v411_v30, %v411_v30  ;;  %v420_v40 = vpack.c.bf16 %v412_v31, %v412_v31 }
  0x28   : > { %655 = vmatpush.bf16.msra.mxu3 %v1314_v17  ;;  %672 = vst [vmem:[#allocation1] ss:$4 sm:$0xff] %v670_v34  ;;  %v417_v41 = vpack.c.bf16 %v409_v32, %v409_v32  ;;  %v418_v42 = vpack.c.bf16 %v410_v33, %v410_v33  ;;  %v741_v47 = vld [vmem:[%s324_s14] sm:$0xff]  ;;  %v740_v30 = vld [vmem:[#allocation2 + $0x4] sm:$0x3] }
  0x29   : > { %617 = vmatpush.bf16.msra.mxu0 %v1319_v18 }
  0x2a   : > { %630 = vmatpush.bf16.msra.mxu1 %v1322_v19 }
  0x2b   : > { %643 = vmatpush.bf16.msra.mxu2 %v1327_v20 }
  0x2c   : > { %656 = vmatpush.bf16.msra.mxu3 %v1330_v21 }
  0x2d   : > { %618 = vmatpush.bf16.msra.mxu0 %v1335_v22 }
  0x2e   : > { %631 = vmatpush.bf16.msra.mxu1 %v1338_v23 }
  0x2f   : > { %644 = vmatpush.bf16.msra.mxu2 %v1343_v24  ;;  %v675_v43 = vld.sshfl [vmem:[#allocation1 + $0x10] sm:$0xff pattern:$0x73625140]  ;;  %v676_v44 = vld.sshfl [vmem:[#allocation1 + $0x18] sm:$0xff pattern:$0x73625140] }
  0x30   : > { %657 = vmatpush.bf16.msra.mxu3 %v1346_v25  ;;  %v673_v45 = vld.sshfl [vmem:[#allocation1] sm:$0xff pattern:$0x73625140]  ;;  %v674_v46 = vld.sshfl [vmem:[#allocation1 + $0x8] sm:$0xff pattern:$0x73625140]  ;;  %v683_v48 = vpack.c.bf16 %v675_v43, %v675_v43  ;;  %v684_v49 = vpack.c.bf16 %v676_v44, %v676_v44 }
  0x31   : > { %619 = vmatpush.bf16.msra.mxu0 %v1351_v26  ;;  %743 = vst [vmem:[#allocation1] ss:$4 sm:$0xff] %v741_v47  ;;  %v681_v50 = vpack.c.bf16 %v673_v45, %v673_v45  ;;  %v682_v51 = vpack.c.bf16 %v674_v46, %v674_v46 }
  0x32   : > { %632 = vmatpush.bf16.msra.mxu1 %v1354_v27 }
  0x33   : > { %645 = vmatpush.bf16.msra.mxu2 %v1359_v28 }
  0x34   : > { %658 = vmatpush.bf16.msra.mxu3 %v1362_v29 }
  0x35   : > { %620 = vmatpush.bf16.msra.mxu0 %v1372_v35 }
  0x36   : > { %633 = vmatpush.bf16.msra.mxu1 %v1375_v36 }
  0x37   : > { %646 = vmatpush.bf16.msra.mxu2 %v1380_v37 }
  0x38   : > { %659 = vmatpush.bf16.msra.mxu3 %v1383_v38  ;;  %621 = vmatmul.bf16.vlgmr.msra.gmra.mxu0 %v417_v41  ;;  %v744_v52 = vld.sshfl [vmem:[#allocation1] sm:$0xff pattern:$0x73625140]  ;;  %v745_v53 = vld.sshfl [vmem:[#allocation1 + $0x8] sm:$0xff pattern:$0x73625140] }
  0x39   : > { %685 = vmatpush.bf16.msrb.mxu0 %v1252_v1  ;;  %634 = vmatmul.bf16.vlgmr.msra.gmra.mxu1 %v418_v42  ;;  %v746_v54 = vld.sshfl [vmem:[#allocation1 + $0x10] sm:$0xff pattern:$0x73625140]  ;;  %v747_v55 = vld.sshfl [vmem:[#allocation1 + $0x18] sm:$0xff pattern:$0x73625140]  ;;  %v752_v56 = vpack.c.bf16 %v744_v52, %v744_v52  ;;  %v753_v57 = vpack.c.bf16 %v745_v53, %v745_v53 }
  0x3a   : > { %698 = vmatpush.bf16.msrb.mxu1 %v1255_v2  ;;  %647 = vmatmul.bf16.vlgmr.msra.gmra.mxu2 %v419_v39  ;;  %v754_v58 = vpack.c.bf16 %v746_v54, %v746_v54  ;;  %v755_v59 = vpack.c.bf16 %v747_v55, %v747_v55 }
  0x3b   : > { %711 = vmatpush.bf16.msrb.mxu2 %v1258_v3  ;;  %660 = vmatmul.bf16.vlgmr.msra.gmra.mxu3 %v420_v40 }
  0x3c   : > { %724 = vmatpush.bf16.msrb.mxu3 %v1261_v4 }
  0x3d   : > { %686 = vmatpush.bf16.msrb.mxu0 %v1266_v5 }
  0x3e   : > { %699 = vmatpush.bf16.msrb.mxu1 %v1269_v6 }
  0x3f   : > { %712 = vmatpush.bf16.msrb.mxu2 %v1274_v7 }
  0x40   : > { %725 = vmatpush.bf16.msrb.mxu3 %v1277_v8 }
  0x41   : > { %687 = vmatpush.bf16.msrb.mxu0 %v1282_v9 }
  0x42   : > { %700 = vmatpush.bf16.msrb.mxu1 %v1285_v10 }
  0x43   : > { %713 = vmatpush.bf16.msrb.mxu2 %v1290_v11 }
  0x44   : > { %726 = vmatpush.bf16.msrb.mxu3 %v1293_v12 }
  0x45   : > { %688 = vmatpush.bf16.msrb.mxu0 %v1298_v13 }
  0x46   : > { %701 = vmatpush.bf16.msrb.mxu1 %v1301_v14 }
  0x47   : > { %714 = vmatpush.bf16.msrb.mxu2 %v1311_v16 }
  0x48   : > { %727 = vmatpush.bf16.msrb.mxu3 %v1314_v17 }
  0x49   : > { %689 = vmatpush.bf16.msrb.mxu0 %v1319_v18 }
  0x4a   : > { %702 = vmatpush.bf16.msrb.mxu1 %v1322_v19 }
  0x4b   : > { %715 = vmatpush.bf16.msrb.mxu2 %v1327_v20 }
  0x4c   : > { %728 = vmatpush.bf16.msrb.mxu3 %v1330_v21 }
  0x4d   : > { %690 = vmatpush.bf16.msrb.mxu0 %v1335_v22 }
  0x4e   : > { %703 = vmatpush.bf16.msrb.mxu1 %v1338_v23 }
  0x4f   : > { %716 = vmatpush.bf16.msrb.mxu2 %v1343_v24 }
  0x50   : > { %729 = vmatpush.bf16.msrb.mxu3 %v1346_v25 }
  0x51   : > { %691 = vmatpush.bf16.msrb.mxu0 %v1351_v26 }
  0x52   : > { %704 = vmatpush.bf16.msrb.mxu1 %v1354_v27 }
  0x53   : > { %717 = vmatpush.bf16.msrb.mxu2 %v1359_v28 }
  0x54   : > { %730 = vmatpush.bf16.msrb.mxu3 %v1362_v29 }
  0x55   : > { %692 = vmatpush.bf16.msrb.mxu0 %v1372_v35 }
  0x56   : > { %705 = vmatpush.bf16.msrb.mxu1 %v1375_v36 }
  0x57   : > { %718 = vmatpush.bf16.msrb.mxu2 %v1380_v37 }
  0x58   : > { %731 = vmatpush.bf16.msrb.mxu3 %v1383_v38  ;;  %693 = vmatmul.bf16.vlgmr.msrb.gmra.mxu0 %v681_v50 }
  0x59   : > { %756 = vmatpush.bf16.msra.mxu0 %v1252_v1  ;;  %706 = vmatmul.bf16.vlgmr.msrb.gmra.mxu1 %v682_v51 }
  0x5a   : > { %769 = vmatpush.bf16.msra.mxu1 %v1255_v2  ;;  %719 = vmatmul.bf16.vlgmr.msrb.gmra.mxu2 %v683_v48  ;;  %v405_v2 = vld [vmem:[#allocation2] sm:$0x3] }
  0x5b   : > { %782 = vmatpush.bf16.msra.mxu2 %v1258_v3  ;;  %732 = vmatmul.bf16.vlgmr.msrb.gmra.mxu3 %v684_v49 }
  0x5c   : > { %795 = vmatpush.bf16.msra.mxu3 %v1261_v4 }
  0x5d   : > { %757 = vmatpush.bf16.msra.mxu0 %v1266_v5 }
  0x5e   : > { %770 = vmatpush.bf16.msra.mxu1 %v1269_v6 }
  0x5f   : > { %783 = vmatpush.bf16.msra.mxu2 %v1274_v7 }
  0x60   : > { %796 = vmatpush.bf16.msra.mxu3 %v1277_v8 }
  0x61   : > { %758 = vmatpush.bf16.msra.mxu0 %v1282_v9 }
  0x62   : > { %771 = vmatpush.bf16.msra.mxu1 %v1285_v10 }
  0x63   : > { %784 = vmatpush.bf16.msra.mxu2 %v1290_v11 }
  0x64   : > { %797 = vmatpush.bf16.msra.mxu3 %v1293_v12 }
  0x65   : > { %759 = vmatpush.bf16.msra.mxu0 %v1298_v13 }
  0x66   : > { %772 = vmatpush.bf16.msra.mxu1 %v1301_v14 }
  0x67   : > { %785 = vmatpush.bf16.msra.mxu2 %v1311_v16 }
  0x68   : > { %798 = vmatpush.bf16.msra.mxu3 %v1314_v17 }
  0x69   : > { %760 = vmatpush.bf16.msra.mxu0 %v1319_v18 }
  0x6a   : > { %773 = vmatpush.bf16.msra.mxu1 %v1322_v19 }
  0x6b   : > { %786 = vmatpush.bf16.msra.mxu2 %v1327_v20 }
  0x6c   : > { %799 = vmatpush.bf16.msra.mxu3 %v1330_v21 }
  0x6d   : > { %761 = vmatpush.bf16.msra.mxu0 %v1335_v22 }
  0x6e   : > { %774 = vmatpush.bf16.msra.mxu1 %v1338_v23 }
  0x6f   : > { %787 = vmatpush.bf16.msra.mxu2 %v1343_v24 }
  0x70   : > { %800 = vmatpush.bf16.msra.mxu3 %v1346_v25 }
  0x71   : > { %762 = vmatpush.bf16.msra.mxu0 %v1351_v26 }
  0x72   : > { %775 = vmatpush.bf16.msra.mxu1 %v1354_v27 }
  0x73   : > { %788 = vmatpush.bf16.msra.mxu2 %v1359_v28 }
  0x74   : > { %801 = vmatpush.bf16.msra.mxu3 %v1362_v29 }
  0x75   : > { %763 = vmatpush.bf16.msra.mxu0 %v1372_v35 }
  0x76   : > { %776 = vmatpush.bf16.msra.mxu1 %v1375_v36 }
  0x77   : > { %789 = vmatpush.bf16.msra.mxu2 %v1380_v37 }
  0x78   : > { %802 = vmatpush.bf16.msra.mxu3 %v1383_v38  ;;  %764 = vmatmul.bf16.vlgmr.msra.gmra.mxu0 %v752_v56 }
  0x79   : > { %777 = vmatmul.bf16.vlgmr.msra.gmra.mxu1 %v753_v57 }
  0x7a   : > { %790 = vmatmul.bf16.vlgmr.msra.gmra.mxu2 %v754_v58 }
  0x7b   : > { %803 = vmatmul.bf16.vlgmr.msra.gmra.mxu3 %v755_v59 }
  0xb5   : > { %v622_v60 = vpop.f32.mrf.mxu0 }
  0xb6   : > { %v635_v61 = vpop.f32.mrf.mxu1 }
  0xb7   : > { %v636_v62 = vadd.f32 %v635_v61, %v622_v60 }
  0xbd   : > { %v648_v63 = vpop.f32.mrf.mxu2  ;;  %v624_v4 = vpop.f32.mrf.mxu0 }
  0xbe   : > { %v661_v0 = vpop.f32.mrf.mxu3  ;;  %v649_v1 = vadd.f32 %v648_v63, %v636_v62  ;;  %v637_v5 = vpop.f32.mrf.mxu1 }
  0xc0   : > { %v662_v3 = vadd.f32 %v661_v0, %v649_v1 }
  0xc2   : > { %v665_v6 = vadd.f32 %v662_v3, %v405_v2 }
  0xc4   : > { %667 = vst.msk [vmem:[#allocation2] sm:$0x3] %vm666_vm1, %v665_v6 }
  0xc5   : > { %v650_v7 = vpop.f32.mrf.mxu2 }
  0xc6   : > { %v663_v8 = vpop.f32.mrf.mxu3 }
  0xd5   : > { %v694_v9 = vpop.f32.mrf.mxu0 }
  0xd6   : > { %v707_v10 = vpop.f32.mrf.mxu1 }
  0xd7   : > { %v708_v11 = vadd.f32 %v707_v10, %v694_v9 }
  0xdd   : > { %v720_v12 = vpop.f32.mrf.mxu2  ;;  %v696_v17 = vpop.f32.mrf.mxu0 }
  0xde   : > { %v733_v13 = vpop.f32.mrf.mxu3  ;;  %v721_v14 = vadd.f32 %v720_v12, %v708_v11  ;;  %v709_v18 = vpop.f32.mrf.mxu1 }
  0xe0   : > { %v734_v16 = vadd.f32 %v733_v13, %v721_v14 }
  0xe2   : > { %v737_v19 = vadd.f32 %v734_v16, %v669_v15 }
  0xe4   : > { %738 = vst.msk [vmem:[#allocation2 + $0x2] sm:$0x3] %vm666_vm1, %v737_v19 }
  0xe5   : > { %v722_v20 = vpop.f32.mrf.mxu2 }
  0xe6   : > { %v735_v21 = vpop.f32.mrf.mxu3 }
  0xf5   : > { %v765_v22 = vpop.f32.mrf.mxu0 }
  0xf6   : > { %v778_v23 = vpop.f32.mrf.mxu1 }
  0xf7   : > { %v779_v24 = vadd.f32 %v778_v23, %v765_v22 }
  0xfd   : > { %v791_v25 = vpop.f32.mrf.mxu2  ;;  %v767_v28 = vpop.f32.mrf.mxu0 }
  0xfe   : > { %v804_v26 = vpop.f32.mrf.mxu3  ;;  %v792_v27 = vadd.f32 %v791_v25, %v779_v24  ;;  %v780_v29 = vpop.f32.mrf.mxu1 }
 0x100   : > { %v805_v31 = vadd.f32 %v804_v26, %v792_v27 }
 0x102   : > { %v808_v32 = vadd.f32 %v805_v31, %v740_v30  ;;  %813 = sbr.rel (%p1109_p6) target bundleno = 414 (0x19e), region = 56 }
 0x104   : > { %809 = vst.msk [vmem:[#allocation2 + $0x4] sm:$0x3] %vm666_vm1, %v808_v32 }
 0x105   : > { %v793_v33 = vpop.f32.mrf.mxu2 }
 0x106   : > { %v806_v34 = vpop.f32.mrf.mxu3 }
 0x107   : > { %v1158_v35 = vld [vmem:[%s1491_s5 + $0x8] sm:$0xff]  ;;  %v1168_v37 = vld [vmem:[%s1490_s4] ss:$0 sm:$0xff]  ;;  %vm842_vm2 = vcmask 261120  }
 0x108   : > { %v820_v36 = vld [vmem:[#allocation2] sm:$0x3]  ;;  %v860_v38 = vld [vmem:[#allocation2 + $0x2] sm:$0x3]  ;;  %852 = vmatpush.bf16.msra.mxu0 %v1158_v35  ;;  %873 = vmatpush.bf16.msra.mxu1 %v1158_v35  ;;  %v1157_v39 = vld [vmem:[%s1491_s5] sm:$0xff] }
 0x109   : > { %895 = vmatpush.bf16.msra.mxu2 %v1158_v35  ;;  %v824_v41 = vadd.f32 %v1168_v37, %v820_v36  ;;  %v861_v42 = vadd.f32 %v1168_v37, %v860_v38  ;;  %v1169_v50 = vld [vmem:[%s1492_s6] ss:$0 sm:$0xff] }
 0x10b   : > { %v882_v40 = vld [vmem:[#allocation2 + $0x4] sm:$0x3]  ;;  %v825_v44 = vmax.f32 %v824_v41, 0.0  ;;  %v862_v45 = vmax.f32 %v861_v42, 0.0 }
 0x10c   : > { %v883_v43 = vadd.f32 %v1168_v37, %v882_v40  ;;  %853 = vmatpush.bf16.msra.mxu0 %v1157_v39  ;;  %874 = vmatpush.bf16.msra.mxu1 %v1157_v39 }
 0x10d   : > { %896 = vmatpush.bf16.msra.mxu2 %v1157_v39  ;;  %v826_v47 = vpack.c.bf16 %v825_v44, %v825_v44  ;;  %v863_v48 = vpack.c.bf16 %v862_v45, %v862_v45 }
 0x10e   : > { %v884_v46 = vmax.f32 %v883_v43, 0.0 }
 0x10f   : > { %1118 = vmatmul.msk.bf16.vlgmr.msra.gmra.mxu0 %vm842_vm2, %v826_v47  ;;  %1119 = vmatmul.msk.bf16.vlgmr.msra.gmra.mxu1 %vm842_vm2, %v863_v48 }
 0x110   : > { %v885_v49 = vpack.c.bf16 %v884_v46, %v884_v46 }
 0x112   : > { %1121 = vmatmul.msk.bf16.vlgmr.msra.gmra.mxu2 %vm842_vm2, %v885_v49 }
 0x18c   : > { %v855_v51 = vpop.f32.mrf.mxu0  ;;  %v876_v52 = vpop.f32.mrf.mxu1 }
 0x18d   : > { %v856_v53 = vadd.f32 %v1169_v50, %v855_v51  ;;  %v877_v54 = vadd.f32 %v1169_v50, %v876_v52 }
 0x18f   : > { %859 = vst [vmem:[%s1493_s7] sm:$0x3] %v856_v53 }
 0x190   : > { %1120 = vst [vmem:[%s1493_s7 + $0x2] sm:$0x3] %v877_v54 }
 0x194   : > { %v857_v57 = vpop.f32.mrf.mxu0  ;;  %v878_v58 = vpop.f32.mrf.mxu1 }
 0x195   : > { %v898_v55 = vpop.f32.mrf.mxu2 }
 0x196   : > { %v899_v56 = vadd.f32 %v1169_v50, %v898_v55 }
 0x198   : > { %1122 = vst [vmem:[%s1493_s7 + $0x4] sm:$0x3] %v899_v56 }
 0x19d   : > { %v900_v59 = vpop.f32.mrf.mxu2 }
 0x19e PF: > { %s17_s24 = sadd.s32 1, %s1176_s24  }
 0x19f   : > { %p14_p7 = scmp.ge.s32.totalorder %s17_s24, 4  }
 0x1a1   :  { %16 = sbr.rel (!%p14_p7) target bundleno = 1 (0x1), region = 95 }

</bundles_post_ra>
